<compile_context>
chip_gen: v6e
topology: v6e:2x2x1
jax: 0.10.0
libtpu: 0.0.40
codegen_flags: <defaults>
</compile_context>

<pallas_src>
import functools

import jax
import jax.numpy as jnp
from jax.experimental import pallas as pl
from jax.experimental.pallas import tpu as pltpu

_LANES = 128
_SUBLANES = 8


def _round_up(x, m):
    return -(-x // m) * m


def _mse_kernel(x_ref, y_ref, o_ref, *, inv_n, valid_rows, chunk_rows,
                needs_mask):
    c = pl.program_id(0)
    i = pl.program_id(1)
    n_inner = pl.num_programs(1)
    tr = x_ref.shape[0]

    # Init the resident lane-dense accumulator at the start of this slice.
    @pl.when(i == 0)
    def _():
        o_ref[...] = jnp.zeros_like(o_ref)

    # Global row index of the first row of this block.
    row0 = (c * n_inner + i) * tr

    if needs_mask:
        # Hoisted once per grid step (not per chunk): JAX does not CSE
        # broadcast_in_dim.
        iota = jax.lax.broadcasted_iota(jnp.int32, (chunk_rows, _LANES), 0)

    def body(k, acc):
        off = pl.multiple_of(k * chunk_rows, chunk_rows)
        xs = x_ref[pl.ds(off, chunk_rows), :].astype(jnp.float32)
        ys = y_ref[pl.ds(off, chunk_rows), :].astype(jnp.float32)
        d = xs - ys
        dd = d * d
        if needs_mask:
            # Mask rows beyond the true row count (edge blocks hold undefined
            # data, so mask explicitly rather than relying on zero fill).
            rid = row0 + off + iota
            dd = jnp.where(rid < valid_rows, dd, 0.0)
        # Vreg-dense partial: (chunk,128) -> (chunk/8, 8, 128) -> (8, 128).
        return acc + dd.reshape(chunk_rows // _SUBLANES, _SUBLANES,
                                _LANES).sum(axis=0)

    acc = jax.lax.fori_loop(0, tr // chunk_rows, body,
                            jnp.zeros((_SUBLANES, _LANES), jnp.float32))
    o_ref[...] += acc[None]

    # Last step of this slice: fold in 1/N so the partials sum to the mean.
    @pl.when(i == n_inner - 1)
    def _():
        o_ref[...] = o_ref[...] * inv_n


def sde_losses_mse(lms_rr, pan_rr, *, block_bytes=4 << 20, chunk_rows=256,
                   num_slices=1, core_parallel=False):
    """MSE over all elements of two equal-shaped arrays (Pallas TPU kernel).

    num_slices / core_parallel: set (2, True) on v7x to split the HBM stream
    across both TensorCores; leave at the (1, False) default on v5e/v6e.
    """
    assert lms_rr.shape == pan_rr.shape, (lms_rr.shape, pan_rr.shape)
    n_elems = int(lms_rr.size)
    dtype = jnp.result_type(lms_rr.dtype, pan_rr.dtype)
    itemsize = jnp.dtype(dtype).itemsize

    x = lms_rr.astype(dtype).reshape(-1)
    y = pan_rr.astype(dtype).reshape(-1)

    # Lane padding only when the element count is not a multiple of 128.
    # Zero pads in BOTH inputs -> zero diff -> exact sum; mean still divides
    # by the ORIGINAL element count.
    rem = n_elems % _LANES
    if rem:
        # TODO(synk): this pad copies the inputs once in XLA; a fully
        # zero-copy path for non-128-multiple sizes would need manual DMA
        # (memory_space=pl.ANY) which is disproportionate for an MSE loss.
        pad = _LANES - rem
        x = jnp.pad(x, (0, pad))
        y = jnp.pad(y, (0, pad))
    rows = x.size // _LANES
    x2d = x.reshape(rows, _LANES)
    y2d = y.reshape(rows, _LANES)

    # Sub-chunk rows must be a multiple of the packed-sublane tile:
    # 8 rows (4B dtypes), 16 (2B), 32 (1B).
    pack = max(_SUBLANES, 32 // itemsize)
    chunk_rows = max(pack, _round_up(chunk_rows, pack))

    # ~block_bytes per input per grid step, rounded to whole chunks.
    target_rows = max(chunk_rows,
                      _round_up(block_bytes // (_LANES * itemsize),
                                chunk_rows))
    tr = min(target_rows, _round_up(rows, chunk_rows))

    total_steps = -(-rows // tr)
    ns = max(1, min(int(num_slices), total_steps))
    if total_steps % ns:
        ns = 1  # avoid fully out-of-bounds blocks from a ragged core split
    steps = total_steps // ns

    needs_mask = (ns * steps * tr) > rows
    inv_n = 1.0 / float(n_elems)

    # Explicit VMEM budget: 2 inputs x 2 pipeline buffers x block + slack.
    vmem_bytes = int(4 * tr * _LANES * itemsize + (8 << 20))

    if core_parallel and ns > 1:
        dims = (getattr(pltpu, "CORE_PARALLEL", "parallel"), "arbitrary")
    else:
        dims = ("parallel", "arbitrary")

    cost = pl.CostEstimate(flops=3 * n_elems, transcendentals=0,
                           bytes_accessed=2 * n_elems * itemsize)

    def in_idx(c, i):
        return (c * steps + i, 0)

    partials = pl.pallas_call(
        functools.partial(_mse_kernel, inv_n=inv_n, valid_rows=rows,
                          chunk_rows=chunk_rows, needs_mask=needs_mask),
        out_shape=jax.ShapeDtypeStruct((ns, _SUBLANES, _LANES), jnp.float32),
        grid_spec=pltpu.PrefetchScalarGridSpec(
            num_scalar_prefetch=0,
            grid=(ns, steps),
            in_specs=[
                pl.BlockSpec((tr, _LANES), in_idx),
                pl.BlockSpec((tr, _LANES), in_idx),
            ],
            out_specs=pl.BlockSpec((1, _SUBLANES, _LANES),
                                   lambda c, i: (c, 0, 0)),
        ),
        compiler_params=pltpu.CompilerParams(
            dimension_semantics=dims,
            vmem_limit_bytes=vmem_bytes,
        ),
        cost_estimate=cost,
    )(x2d, y2d)

    # Partials are already scaled by 1/N; summing them yields the mean.
    return jnp.sum(partials, dtype=jnp.float32)


if __name__ == "__main__":
    key = jax.random.PRNGKey(0)
    k1, k2, k3, k4 = jax.random.split(key, 4)

    # Small NCHW shapes consistent with the module's use (two image-like inputs).
    lms_rr = jax.random.normal(k1, (2, 4, 16, 16), dtype=jnp.float32)
    pan_rr = jax.random.normal(k2, (2, 4, 16, 16), dtype=jnp.float32)

    loss = sde_losses_mse(lms_rr, pan_rr)
    jax.block_until_ready(loss)
    ref = jnp.mean((lms_rr - pan_rr) ** 2)
    assert jnp.allclose(loss, ref, rtol=1e-5, atol=1e-6), (loss, ref)

    # Non-128-multiple element count: lane pad + in-kernel row masking path.
    a = jax.random.normal(k3, (3, 5, 33, 17), dtype=jnp.float32)
    b = jax.random.normal(k4, (3, 5, 33, 17), dtype=jnp.float32)
    loss2 = sde_losses_mse(a, b)
    jax.block_until_ready(loss2)
    ref2 = jnp.mean((a - b) ** 2)
    assert jnp.allclose(loss2, ref2, rtol=1e-5, atol=1e-6), (loss2, ref2)

    # bf16 inputs: exercises the in-kernel f32 upcast path.
    a16 = a.reshape(-1)[: 15 * 128].reshape(15, 128).astype(jnp.bfloat16)
    b16 = b.reshape(-1)[: 15 * 128].reshape(15, 128).astype(jnp.bfloat16)
    loss3 = sde_losses_mse(a16, b16)
    jax.block_until_ready(loss3)
    ref3 = jnp.mean((a16.astype(jnp.float32) - b16.astype(jnp.float32)) ** 2)
    assert jnp.allclose(loss3, ref3, rtol=2e-2, atol=1e-4), (loss3, ref3)

    print("KERNEL_OK")
</pallas_src>

<mosaic_0001>
module attributes {stable_mosaic.version = 11 : i64} {
  func.func @_mse_kernel(%arg0: i32, %arg1: i32, %arg2: memref<256x128xf32, #tpu.memory_space<vmem>>, %arg3: memref<256x128xf32, #tpu.memory_space<vmem>>, %arg4: memref<1x8x128xf32, #tpu.memory_space<vmem>>) attributes {dimension_semantics = [#tpu.dimension_semantics<parallel>, #tpu.dimension_semantics<arbitrary>], iteration_bounds = array<i64: 1, 1>, scalar_prefetch = 0 : i64, scratch_operands = 0 : i64, tpu.core_type = #tpu.core_type<tc>, window_params = [{transform_indices = @transform_0, window_bounds = array<i64: 256, 128>}, {transform_indices = @transform_1, window_bounds = array<i64: 256, 128>}, {transform_indices = @transform_2, window_bounds = array<i64: 1, 8, 128>}]} {
    %c0_i32 = arith.constant 0 : i32
    %0 = arith.cmpi eq, %arg1, %c0_i32 : i32
    %1 = arith.extui %0 : i1 to i32
    %c0_i32_0 = arith.constant 0 : i32
    %2 = arith.cmpi ne, %1, %c0_i32_0 : i32
    scf.if %2 {
      %cst_15 = arith.constant 0.000000e+00 : f32
      %33 = vector.broadcast %cst_15 : f32 to vector<1x8x128xf32>
      %c0_16 = arith.constant 0 : index
      %c0_17 = arith.constant 0 : index
      %c0_18 = arith.constant 0 : index
      %34 = vector.load %arg4[%c0_16, %c0_17, %c0_18] : memref<1x8x128xf32, #tpu.memory_space<vmem>>, vector<1x8x128xf32>
      tpu.vector_store %arg4[%c0_16, %c0_17, %c0_18], %33 {strides = array<i32>} : memref<1x8x128xf32, #tpu.memory_space<vmem>>, vector<1x8x128xf32>,
    } else {
    }
    %c1_i32 = arith.constant 1 : i32
    %3 = arith.muli %arg0, %c1_i32 : i32
    %4 = arith.addi %3, %arg1 : i32
    %c256_i32 = arith.constant 256 : i32
    %5 = arith.muli %4, %c256_i32 : i32
    %6 = tpu.iota {dimensions = array<i32: 0>} : vector<256x128xi32>
    %cst = arith.constant 0.000000e+00 : f32
    %7 = vector.broadcast %cst : f32 to vector<8x128xf32>
    %c0_i32_1 = arith.constant 0 : i32
    %c256_i32_2 = arith.constant 256 : i32
    %8 = arith.muli %c0_i32_1, %c256_i32_2 : i32
    %9 = tpu.assume_multiple %8, 256 : i32
    %10 = arith.index_cast %9 : i32 to index
    %c0 = arith.constant 0 : index
    %11 = vector.load %arg2[%10, %c0] : memref<256x128xf32, #tpu.memory_space<vmem>>, vector<256x128xf32>
    %12 = arith.index_cast %9 : i32 to index
    %c0_3 = arith.constant 0 : index
    %13 = vector.load %arg3[%12, %c0_3] : memref<256x128xf32, #tpu.memory_space<vmem>>, vector<256x128xf32>
    %14 = arith.subf %11, %13 : vector<256x128xf32>
    %15 = arith.mulf %14, %14 : vector<256x128xf32>
    %16 = arith.addi %5, %9 : i32
    %17 = vector.broadcast %16 : i32 to vector<256x128xi32>
    %18 = arith.addi %17, %6 : vector<256x128xi32>
    %c16_i32 = arith.constant 16 : i32
    %19 = vector.broadcast %c16_i32 : i32 to vector<256x128xi32>
    %20 = arith.cmpi slt, %18, %19 : vector<256x128xi32>
    %cst_4 = arith.constant 0.000000e+00 : f32
    %21 = vector.broadcast %cst_4 : f32 to vector<256x128xf32>
    %22 = arith.select %20, %15, %21 : vector<256x128xi1>, vector<256x128xf32>
    %23 = vector.shape_cast %22 : vector<256x128xf32> to vector<32x8x128xf32>
    %cst_5 = arith.constant dense<0.000000e+00> : vector<8x128xf32>
    %24 = vector.multi_reduction <add>, %23, %cst_5 [0] : vector<32x8x128xf32> to vector<8x128xf32>
    %25 = arith.addf %7, %24 : vector<8x128xf32>
    %c1_i32_6 = arith.constant 1 : i32
    %c0_7 = arith.constant 0 : index
    %c0_8 = arith.constant 0 : index
    %c0_9 = arith.constant 0 : index
    %26 = vector.load %arg4[%c0_7, %c0_8, %c0_9] : memref<1x8x128xf32, #tpu.memory_space<vmem>>, vector<1x8x128xf32>
    %27 = vector.shape_cast %25 : vector<8x128xf32> to vector<1x8x128xf32>
    %28 = arith.addf %26, %27 : vector<1x8x128xf32>
    %c0_10 = arith.constant 0 : index
    %c0_11 = arith.constant 0 : index
    %c0_12 = arith.constant 0 : index
    %29 = vector.load %arg4[%c0_10, %c0_11, %c0_12] : memref<1x8x128xf32, #tpu.memory_space<vmem>>, vector<1x8x128xf32>
    tpu.vector_store %arg4[%c0_10, %c0_11, %c0_12], %28 {strides = array<i32>} : memref<1x8x128xf32, #tpu.memory_space<vmem>>, vector<1x8x128xf32>,
    %c0_i32_13 = arith.constant 0 : i32
    %30 = arith.cmpi eq, %arg1, %c0_i32_13 : i32
    %31 = arith.extui %30 : i1 to i32
    %c0_i32_14 = arith.constant 0 : i32
    %32 = arith.cmpi ne, %31, %c0_i32_14 : i32
    scf.if %32 {
      %c0_15 = arith.constant 0 : index
      %c0_16 = arith.constant 0 : index
      %c0_17 = arith.constant 0 : index
      %33 = vector.load %arg4[%c0_15, %c0_16, %c0_17] : memref<1x8x128xf32, #tpu.memory_space<vmem>>, vector<1x8x128xf32>
      %cst_18 = arith.constant 4.8828125E-4 : f32
      %34 = vector.broadcast %cst_18 : f32 to vector<1x8x128xf32>
      %35 = arith.mulf %33, %34 : vector<1x8x128xf32>
      %c0_19 = arith.constant 0 : index
      %c0_20 = arith.constant 0 : index
      %c0_21 = arith.constant 0 : index
      %36 = vector.load %arg4[%c0_19, %c0_20, %c0_21] : memref<1x8x128xf32, #tpu.memory_space<vmem>>, vector<1x8x128xf32>
      tpu.vector_store %arg4[%c0_19, %c0_20, %c0_21], %35 {strides = array<i32>} : memref<1x8x128xf32, #tpu.memory_space<vmem>>, vector<1x8x128xf32>,
    } else {
    }
    return
  }
  func.func @transform_0(%arg0: i32, %arg1: i32) -> (i32, i32) {
    %c1_i32 = arith.constant 1 : i32
    %0 = arith.muli %arg0, %c1_i32 : i32
    %1 = arith.addi %0, %arg1 : i32
    %c0_i32 = arith.constant 0 : i32
    %c0_i32_0 = arith.constant 0 : i32
    return %1, %c0_i32 : i32, i32
  }
  func.func @transform_1(%arg0: i32, %arg1: i32) -> (i32, i32) {
    %c1_i32 = arith.constant 1 : i32
    %0 = arith.muli %arg0, %c1_i32 : i32
    %1 = arith.addi %0, %arg1 : i32
    %c0_i32 = arith.constant 0 : i32
    %c0_i32_0 = arith.constant 0 : i32
    return %1, %c0_i32 : i32, i32
  }
  func.func @transform_2(%arg0: i32, %arg1: i32) -> (i32, i32, i32) {
    %c0_i32 = arith.constant 0 : i32
    %c0_i32_0 = arith.constant 0 : i32
    %c0_i32_1 = arith.constant 0 : i32
    return %arg0, %c0_i32, %c0_i32_0 : i32, i32, i32
  }
}

</mosaic_0001>

<bundles_post_ra>
// kernel: tpu_custom_call.1
= control target key start
LH: loop header
LB: loop body
LE: loop exit
PB: predicated region body
PF: predicated region fallthrough
CT: control target
= control target key end

     0   :  { %7 = vsyncpa [#allocation3], 0  ;;  %s488_s0 = inlined_call_operand.hbm [shape: f32[16,128], index: 0, kind: input, shape index: {}]   ;;  %s489_s1 = inlined_call_operand.hbm [shape: f32[16,128], index: 1, kind: input, shape index: {}]   ;;  %s490_s2 = inlined_call_operand.hbm [shape: f32[1,8,128], index: 2, kind: output, shape index: {}]  }
   0x1   :  { %8 = vsyncpa [#allocation6], 0 }
   0x2   :  { %9 = vsyncpa [#allocation4], 0 }
   0x3   :  { %18 = vsyncadd [#allocation3], 3840  ;;  %s459_s9 = smov [#allocation2]  }
   0x4   :  { %s23_s10 = sshll.u32 %s459_s9, 4  ;;  %s24_s10 = int_to_ptr.vmem [resolvable:$true] %s23_s10 }
   0x5   :  { %s401_s11 = scalar_lea.vmem %s24_s10, 256  ;;  %s405_s12 = scalar_lea.vmem %s24_s10, 4096 }
   0x6   :  { %p402_p0 = scmp.ne.s32.totalorder %s24_s10, %s401_s11  ;;  %p406_p1 = scmp.lt.s32.totalorder %s24_s10, %s24_s10 }
   0x7   :  { %p407_p2 = scmp.lt.s32.totalorder %s405_s12, %s401_s11 }
   0x9   :  { %p408_p3 = por %p407_p2, %p406_p1 }
   0xb   :  { %p409_p4 = pnand %p408_p3, %p402_p0 }
   0xd   :  { %412 = shalt.err (!%p409_p4)
}
   0xe   :  { %s460_s13 = smov 128   ;;  %s461_s14 = smov 8  }
   0xf   :  { %29 = dma.hbm_to_vmem [thread:$0]  %s488_s0, 256, %s24_s10, [#allocation3], %s460_s13, %s460_s13, %s461_s14  }
  0x10   :  { %38 = vsyncadd [#allocation6], 3840  ;;  %s462_s17 = smov [#allocation5]  }
  0x11   :  { %s43_s18 = sshll.u32 %s462_s17, 4  ;;  %s44_s18 = int_to_ptr.vmem [resolvable:$true] %s43_s18 }
  0x12   :  { %s421_s19 = scalar_lea.vmem %s44_s18, 256  ;;  %s425_s20 = scalar_lea.vmem %s44_s18, 4096 }
  0x13   :  { %p422_p5 = scmp.ne.s32.totalorder %s44_s18, %s421_s19  ;;  %p426_p6 = scmp.lt.s32.totalorder %s44_s18, %s44_s18 }
  0x14   :  { %p427_p7 = scmp.lt.s32.totalorder %s425_s20, %s421_s19 }
  0x16   :  { %p428_p8 = por %p427_p7, %p426_p6 }
  0x18   :  { %p429_p9 = pnand %p428_p8, %p422_p5 }
  0x1a   :  { %432 = shalt.err (!%p429_p9)
}
  0x1b   :  { %49 = dma.hbm_to_vmem [thread:$0]  %s489_s1, 256, %s44_s18, [#allocation6], %s460_s13, %s460_s13, %s461_s14  }
  0x1c   :  { %453 = dma.done.wait [#allocation3], 4096  }
  0x1d   :  { %454 = vsyncadd [#allocation3], 4294963200 }
  0x1e   :  { %455 = dma.done.wait [#allocation6], 4096  }
  0x1f   :  { %456 = vsyncadd [#allocation6], 4294963200  ;;  %v104_v0 = vld [vmem:[#allocation2] sm:$0xff]  ;;  %v105_v1 = vld [vmem:[#allocation2 + $0x8] sm:$0xff]  ;;  %s463_s0 = smov [#allocation7]  }
  0x20   :  { %v136_v2 = vld [vmem:[#allocation5] sm:$0xff]  ;;  %v137_v3 = vld [vmem:[#allocation5 + $0x8] sm:$0xff]  ;;  %s377_s23 = sshll.u32 %s463_s0, 4  ;;  %s378_s23 = int_to_ptr.vmem [resolvable:$true] %s377_s23 }
  0x21   :  { %v168_v4 = vsub.f32 %v104_v0, %v136_v2  ;;  %v169_v5 = vsub.f32 %v105_v1, %v137_v3  ;;  %s433_s24 = scalar_lea.vmem %s378_s23, 128  ;;  %p438_p11 = scmp.lt.s32.totalorder %s378_s23, %s378_s23 }
  0x22   :  { %p434_p10 = scmp.ne.s32.totalorder %s378_s23, %s433_s24  ;;  %p439_p12 = scmp.lt.s32.totalorder %s433_s24, %s433_s24 }
  0x23   :  { %v200_v6 = vmul.f32 %v168_v4, %v168_v4  ;;  %v201_v7 = vmul.f32 %v169_v5, %v169_v5 }
  0x24   :  { %p440_p13 = por %p439_p12, %p438_p11 }
  0x25   :  { %v330_v8 = vadd.f32 %v201_v7, %v200_v6 }
  0x26   :  { %p441_p0 = pnand %p440_p13, %p434_p10 }
  0x27   :  { %v369_v9 = vmul.f32 0.00048828125, %v330_v8 }
  0x29   :  { %370 = vst [vmem:[#allocation7] sm:$0xff] %v369_v9 }
  0x2a   :  { %444 = shalt.err (!%p441_p0)
}
  0x2b   :  { %380 = dma.vmem_to_hbm [thread:$0]  %s378_s23, 128, %s490_s2, [#allocation4]  }
  0x2c   :  { %457 = dma.done.wait [#allocation4], 128  }
  0x2d   :  { %458 = vsyncadd [#allocation4], 4294967168 }
  0x2e   :  { %384 = vsyncpa [#allocation3], 1 }
  0x2f   :  { %385 = vsyncpa [#allocation6], 1 }
  0x30   :  { %386 = vsyncpa [#allocation4], 1 }

</bundles_post_ra>
